<compile_context>
chip_gen: v6e
topology: v6e:2x2x1
jax: 0.10.0
libtpu: 0.0.40
codegen_flags: <defaults>
</compile_context>

<pallas_src>
import numpy as np
import jax
import jax.numpy as jnp
from jax import lax
from jax.experimental import pallas as pl
from jax.experimental.pallas import tpu as pltpu

# matcher weights (HungarianMatcher.__init__ defaults)
COST_CLASS = 1.0
COST_BBOX = 1.0
COST_GIOU = 1.0


def _round_up(x, m):
    return ((x + m - 1) // m) * m


# --------------------------------------------------------------------------
# Pallas kernel: one (batch, query-tile) cost block
# --------------------------------------------------------------------------
def cost_kernel(logits_ref, pbox_ref, ids_ref, tbox_t_ref, c_ref):
    """logits_ref : [1, QT, C]   classification logits
    pbox_ref   : [1, QT, 4]   predicted boxes, cxcywh
    ids_ref    : [1, 1,  Mp]  int32 target class ids (-1 marks padding)
    tbox_t_ref : [1, 4,  Mp]  target boxes, cxcywh, targets on the lane axis
    c_ref      : [1, QT, Mp]  output cost block (f32)
    """
    logits = logits_ref[0].astype(jnp.float32)                 # [QT, C]
    num_classes = logits.shape[-1]
    m_pad = ids_ref.shape[-1]

    # ---- classification cost: 1 - softmax(logits)[:, tgt_ids] -------------
    # softmax numerator only; the 1/sum normalization is folded into the
    # (smaller) [QT, Mp] matmul result via an EUP reciprocal.
    mx = jnp.max(logits, axis=-1, keepdims=True)
    e = jnp.exp(logits - mx)                                   # [QT, C]
    s = jnp.sum(e, axis=-1, keepdims=True)                     # [QT, 1]

    # gather-by-target-id expressed as a one-hot matmul (MXU); padded id -1
    # gives an all-zero column -> cost_class = 1 there (later sliced off).
    ids = ids_ref[0]                                           # [1, Mp] int32
    onehot = (lax.broadcasted_iota(jnp.int32, (num_classes, m_pad), 0)
              == ids).astype(jnp.float32)                      # [C, Mp]
    p_sel = jnp.dot(e, onehot, preferred_element_type=jnp.float32)
    p_sel = p_sel * pl.reciprocal(s, approx=True)              # [QT, Mp]
    cost_class = 1.0 - p_sel

    # ---- box coordinates (hoisted once; shared by L1 and GIoU) ------------
    pbox = pbox_ref[0].astype(jnp.float32)                     # [QT, 4]
    tbox = tbox_t_ref[0].astype(jnp.float32)                   # [4, Mp]
    pcx, pcy, pw, ph = (pbox[:, 0:1], pbox[:, 1:2],
                        pbox[:, 2:3], pbox[:, 3:4])            # [QT, 1]
    tcx, tcy, tw, th = (tbox[0:1, :], tbox[1:2, :],
                        tbox[2:3, :], tbox[3:4, :])            # [1, Mp]

    # ---- L1 cdist (cxcywh) -------------------------------------------------
    cost_bbox = jnp.abs(pcx - tcx)
    cost_bbox = cost_bbox + jnp.abs(pcy - tcy)
    cost_bbox = cost_bbox + jnp.abs(pw - tw)
    cost_bbox = cost_bbox + jnp.abs(ph - th)                   # [QT, Mp]

    # ---- generalized IoU cost ----------------------------------------------
    px0 = pcx - 0.5 * pw; py0 = pcy - 0.5 * ph
    px1 = pcx + 0.5 * pw; py1 = pcy + 0.5 * ph                 # [QT, 1]
    tx0 = tcx - 0.5 * tw; ty0 = tcy - 0.5 * th
    tx1 = tcx + 0.5 * tw; ty1 = tcy + 0.5 * th                 # [1, Mp]

    area1 = (px1 - px0) * (py1 - py0)                          # [QT, 1]
    area2 = (tx1 - tx0) * (ty1 - ty0)                          # [1, Mp]

    iw = jnp.maximum(jnp.minimum(px1, tx1) - jnp.maximum(px0, tx0), 0.0)
    ih = jnp.maximum(jnp.minimum(py1, ty1) - jnp.maximum(py0, ty0), 0.0)
    inter = iw * ih                                            # [QT, Mp]
    union = area1 + area2 - inter
    iou = inter * pl.reciprocal(union, approx=True)            # EUP, not VALU

    ew = jnp.maximum(jnp.maximum(px1, tx1) - jnp.minimum(px0, tx0), 0.0)
    eh = jnp.maximum(jnp.maximum(py1, ty1) - jnp.minimum(py0, ty0), 0.0)
    earea = ew * eh
    giou = iou - (earea - union) * pl.reciprocal(earea, approx=True)

    c_ref[0] = (COST_BBOX * cost_bbox
                + COST_CLASS * cost_class
                - COST_GIOU * giou)


def compute_cost_matrix(logits, pred_boxes, tgt_ids_pad, tgt_boxes_t_pad):
    """logits [B,Qp,C], pred_boxes [B,Qp,4], tgt_ids_pad [B,1,Mp] int32,
    tgt_boxes_t_pad [B,4,Mp] f32. Returns per-batch cost blocks [B,Qp,Mp]."""
    B, Qp, C = logits.shape
    Mp = tgt_ids_pad.shape[-1]
    q_tile = Qp if Qp <= 128 else 128        # Qp padded so q_tile | Qp
    nqt = Qp // q_tile

    return pl.pallas_call(
        cost_kernel,
        out_shape=jax.ShapeDtypeStruct((B, Qp, Mp), jnp.float32),
        grid=(B, nqt),
        in_specs=[
            pl.BlockSpec((1, q_tile, C), lambda b, q: (b, q, 0)),
            pl.BlockSpec((1, q_tile, 4), lambda b, q: (b, q, 0)),
            pl.BlockSpec((1, 1, Mp), lambda b, q: (b, 0, 0)),
            pl.BlockSpec((1, 4, Mp), lambda b, q: (b, 0, 0)),
        ],
        out_specs=pl.BlockSpec((1, q_tile, Mp), lambda b, q: (b, q, 0)),
        compiler_params=pltpu.CompilerParams(
            dimension_semantics=("parallel", "parallel")),
    )(logits, pred_boxes, tgt_ids_pad, tgt_boxes_t_pad)


# --------------------------------------------------------------------------
# Host-side wrapper: pad, run kernel, Hungarian assignment (numpy)
# --------------------------------------------------------------------------
def _pad_and_compute(outputs, targets):
    """Pad queries/targets, run kernel; returns (cost [B,Qp,Mp] np, Q, sizes)."""
    logits = outputs["logits"]               # [B, Q, C]
    pred_boxes = outputs["pred_boxes"]       # [B, Q, 4]
    B, Q, C = logits.shape
    sizes = [int(t["boxes"].shape[0]) for t in targets]

    # lane-dense target padding (multiple of 128)
    m_max = max(sizes) if sizes else 1
    Mp = _round_up(max(m_max, 1), 128)

    # sublane/tile-friendly query padding
    Qp = _round_up(Q, 8)
    if Qp > 128:
        Qp = _round_up(Q, 128)
    if Qp != Q:
        logits_p = jnp.pad(logits, ((0, 0), (0, Qp - Q), (0, 0)))
        pbox_p = jnp.pad(pred_boxes, ((0, 0), (0, Qp - Q), (0, 0)))
    else:
        logits_p, pbox_p = logits, pred_boxes

    # Padded target columns: id = -1 (all-zero one-hot -> cost_class = 1) and
    # a dummy unit box so union/enclosing area never hit zero (no inf/NaN).
    # They are sliced off before the assignment step.
    ids_pad = np.full((B, 1, Mp), -1, dtype=np.int32)
    tbox_pad = np.zeros((B, 4, Mp), dtype=np.float32)
    tbox_pad[:, 0:2, :] = 0.5
    tbox_pad[:, 2:4, :] = 1.0
    for b, t in enumerate(targets):
        s = sizes[b]
        if s:
            labels = np.asarray(t["class_labels"]).astype(np.int64)
            # torch-style negative indexing (label 0 -> class C-1) via modulo
            ids_pad[b, 0, :s] = ((labels - 1) % C).astype(np.int32)
            tbox_pad[b, :, :s] = np.asarray(t["boxes"], dtype=np.float32).T

    cmat = compute_cost_matrix(logits_p, pbox_p,
                               jnp.asarray(ids_pad), jnp.asarray(tbox_pad))
    cmat = jax.block_until_ready(cmat)
    return np.asarray(cmat), Q, sizes


def _linear_sum_assignment(cost):
    """Rectangular min-cost assignment (Hungarian / shortest augmenting path).

    Pure numpy replacement for scipy.optimize.linear_sum_assignment.
    Returns (row_idx, col_idx) with len == min(R, C), sorted by row index.
    """
    cost = np.asarray(cost, dtype=np.float64)
    R, C = cost.shape
    if R == 0 or C == 0:
        return (np.zeros(0, dtype=np.int64), np.zeros(0, dtype=np.int64))
    n = max(R, C)
    pad_val = (cost.max() if cost.size else 0.0) + 1.0
    sq = np.full((n, n), pad_val, dtype=np.float64)
    sq[:R, :C] = cost

    INF = float("inf")
    u = np.zeros(n + 1)
    v = np.zeros(n + 1)
    p = np.zeros(n + 1, dtype=np.int64)    # p[j] = row (1-based) matched to col j
    way = np.zeros(n + 1, dtype=np.int64)
    for i in range(1, n + 1):
        p[0] = i
        j0 = 0
        minv = np.full(n + 1, INF)
        used = np.zeros(n + 1, dtype=bool)
        while True:
            used[j0] = True
            i0 = p[j0]
            delta = INF
            j1 = 0
            for j in range(1, n + 1):
                if not used[j]:
                    cur = sq[i0 - 1, j - 1] - u[i0] - v[j]
                    if cur < minv[j]:
                        minv[j] = cur
                        way[j] = j0
                    if minv[j] < delta:
                        delta = minv[j]
                        j1 = j
            for j in range(n + 1):
                if used[j]:
                    u[p[j]] += delta
                    v[j] -= delta
                else:
                    minv[j] -= delta
            j0 = j1
            if p[j0] == 0:
                break
        while True:
            j1 = way[j0]
            p[j0] = p[j1]
            j0 = j1
            if j0 == 0:
                break

    rows, cols = [], []
    for j in range(1, n + 1):
        i = p[j] - 1
        jj = j - 1
        if i < R and jj < C:
            rows.append(i)
            cols.append(jj)
    rows = np.asarray(rows, dtype=np.int64)
    cols = np.asarray(cols, dtype=np.int64)
    order = np.argsort(rows)
    return rows[order], cols[order]


def _assign_from_cost(c_np, Q, sizes):
    # TODO(synk): linear_sum_assignment (Hungarian algorithm) is a sequential,
    # data-dependent algorithm with no clean Pallas equivalent; done host-side.
    indices = []
    for b, s in enumerate(sizes):
        i, j = _linear_sum_assignment(c_np[b, :Q, :s])
        indices.append((np.asarray(i, dtype=np.int64),
                        np.asarray(j, dtype=np.int64)))
    return indices


def hungarian_matcher(outputs, targets):
    """Mirror of HungarianMatcher.forward (cost_class=cost_bbox=cost_giou=1)."""
    c_np, Q, sizes = _pad_and_compute(outputs, targets)
    return _assign_from_cost(c_np, Q, sizes)


# --------------------------------------------------------------------------
# Numpy reference of the per-batch diagonal cost blocks (f64)
# --------------------------------------------------------------------------
def _reference_cost_blocks(outputs, targets):
    logits = np.asarray(outputs["logits"], dtype=np.float64)
    pred_boxes = np.asarray(outputs["pred_boxes"], dtype=np.float64)
    B, Q, C = logits.shape
    e = np.exp(logits - logits.max(-1, keepdims=True))
    probs = e / e.sum(-1, keepdims=True)

    def xyxy(x):
        cx, cy, w, h = x[..., 0], x[..., 1], x[..., 2], x[..., 3]
        return np.stack([cx - 0.5 * w, cy - 0.5 * h,
                         cx + 0.5 * w, cy + 0.5 * h], -1)

    blocks = []
    for b, t in enumerate(targets):
        ids = (np.asarray(t["class_labels"]).astype(np.int64) - 1) % C
        tb = np.asarray(t["boxes"], dtype=np.float64)
        cost_class = 1.0 - probs[b][:, ids]
        cost_bbox = np.abs(pred_boxes[b][:, None, :] - tb[None, :, :]).sum(-1)
        p, g = xyxy(pred_boxes[b]), xyxy(tb)
        a1 = (p[:, 2] - p[:, 0]) * (p[:, 3] - p[:, 1])
        a2 = (g[:, 2] - g[:, 0]) * (g[:, 3] - g[:, 1])
        lt = np.maximum(p[:, None, :2], g[None, :, :2])
        rb = np.minimum(p[:, None, 2:], g[None, :, 2:])
        wh = np.clip(rb - lt, 0, None)
        inter = wh[..., 0] * wh[..., 1]
        union = a1[:, None] + a2[None, :] - inter
        iou = inter / union
        lt2 = np.minimum(p[:, None, :2], g[None, :, :2])
        rb2 = np.maximum(p[:, None, 2:], g[None, :, 2:])
        wh2 = np.clip(rb2 - lt2, 0, None)
        earea = wh2[..., 0] * wh2[..., 1]
        giou = iou - (earea - union) / earea
        blocks.append(COST_BBOX * cost_bbox + COST_CLASS * cost_class
                      - COST_GIOU * giou)
    return blocks


if __name__ == "__main__":
    key = jax.random.PRNGKey(0)
    B, Q, NUM_CLASSES = 2, 8, 6
    sizes = [3, 4]  # num target boxes per batch element

    k1, k2, k3, k4, _ = jax.random.split(key, 5)
    logits = jax.random.normal(k1, (B, Q, NUM_CLASSES), dtype=jnp.float32)
    pred_cxcy = jax.random.uniform(k2, (B, Q, 2), minval=0.2, maxval=0.8)
    pred_wh = jax.random.uniform(k3, (B, Q, 2), minval=0.05, maxval=0.3)
    pred_boxes = jnp.concatenate([pred_cxcy, pred_wh], axis=-1)

    targets = []
    tk = k4
    for b, s in enumerate(sizes):
        tk, ka, kb, kc = jax.random.split(tk, 4)
        labels = jax.random.randint(ka, (s,), 1, NUM_CLASSES + 1)  # labels in [1, C]
        cxcy = jax.random.uniform(kb, (s, 2), minval=0.2, maxval=0.8)
        wh = jax.random.uniform(kc, (s, 2), minval=0.05, maxval=0.3)
        targets.append({"class_labels": labels,
                        "boxes": jnp.concatenate([cxcy, wh], axis=-1)})

    outputs = {"logits": logits, "pred_boxes": pred_boxes}

    # run the Pallas kernel once and check vs numpy reference
    # (loose tolerance: approx EUP reciprocals in the kernel)
    c_np, q_real, real_sizes = _pad_and_compute(outputs, targets)
    ref_blocks = _reference_cost_blocks(outputs, targets)
    for b, s in enumerate(real_sizes):
        err = np.max(np.abs(c_np[b, :q_real, :s] - ref_blocks[b]))
        assert err < 3e-2, f"cost block mismatch (batch {b}): max abs err {err}"

    # Hungarian assignment on the same cost blocks (no kernel recompute)
    indices = _assign_from_cost(c_np, q_real, real_sizes)

    # sanity: per-batch match count == min(num_queries, num_target_boxes),
    # and the match is no worse than the reference-cost optimal total.
    for b, ((i_idx, j_idx), s) in enumerate(zip(indices, real_sizes)):
        assert len(i_idx) == len(j_idx) == min(Q, s)
        ri, rj = _linear_sum_assignment(ref_blocks[b])
        got = float(ref_blocks[b][i_idx, j_idx].sum())
        best = float(ref_blocks[b][ri, rj].sum())
        assert got <= best + 1e-2, f"suboptimal assignment (batch {b})"

    print("KERNEL_OK")
</pallas_src>

<mosaic_0001>
module attributes {stable_mosaic.version = 11 : i64} {
  func.func @cost_kernel(%arg0: i32, %arg1: i32, %arg2: memref<1x8x6xf32, #tpu.memory_space<vmem>>, %arg3: memref<1x8x4xf32, #tpu.memory_space<vmem>>, %arg4: memref<1x1x128xi32, #tpu.memory_space<vmem>>, %arg5: memref<1x4x128xf32, #tpu.memory_space<vmem>>, %arg6: memref<1x8x128xf32, #tpu.memory_space<vmem>>) attributes {dimension_semantics = [#tpu.dimension_semantics<parallel>, #tpu.dimension_semantics<parallel>], iteration_bounds = array<i64: 2, 1>, scalar_prefetch = 0 : i64, scratch_operands = 0 : i64, tpu.core_type = #tpu.core_type<tc>, window_params = [{transform_indices = @transform_0, window_bounds = array<i64: 1, 8, 6>}, {transform_indices = @transform_1, window_bounds = array<i64: 1, 8, 4>}, {transform_indices = @transform_2, window_bounds = array<i64: 1, 1, 128>}, {transform_indices = @transform_3, window_bounds = array<i64: 1, 4, 128>}, {transform_indices = @transform_4, window_bounds = array<i64: 1, 8, 128>}]} {
    %c0 = arith.constant 0 : index
    %c0_0 = arith.constant 0 : index
    %c0_1 = arith.constant 0 : index
    %0 = vector.load %arg2[%c0, %c0_0, %c0_1] : memref<1x8x6xf32, #tpu.memory_space<vmem>>, vector<1x8x6xf32>
    %1 = vector.shape_cast %0 : vector<1x8x6xf32> to vector<8x6xf32>
    %cst = arith.constant dense<0xFF800000> : vector<8xf32>
    %2 = vector.multi_reduction <maximumf>, %1, %cst [1] : vector<8x6xf32> to vector<8xf32>
    %3 = vector.shape_cast %2 : vector<8xf32> to vector<8x1xf32>
    %4 = vector.broadcast %3 : vector<8x1xf32> to vector<8x6xf32>
    %5 = arith.subf %1, %4 : vector<8x6xf32>
    %6 = math.exp %5 : vector<8x6xf32>
    %cst_2 = arith.constant dense<0.000000e+00> : vector<8xf32>
    %7 = vector.multi_reduction <add>, %6, %cst_2 [1] : vector<8x6xf32> to vector<8xf32>
    %8 = vector.shape_cast %7 : vector<8xf32> to vector<8x1xf32>
    %c0_3 = arith.constant 0 : index
    %c0_4 = arith.constant 0 : index
    %c0_5 = arith.constant 0 : index
    %9 = vector.load %arg4[%c0_3, %c0_4, %c0_5] : memref<1x1x128xi32, #tpu.memory_space<vmem>>, vector<1x1x128xi32>
    %10 = vector.shape_cast %9 : vector<1x1x128xi32> to vector<1x128xi32>
    %11 = tpu.iota {dimensions = array<i32: 0>} : vector<6x128xi32>
    %12 = vector.broadcast %10 : vector<1x128xi32> to vector<6x128xi32>
    %13 = arith.cmpi eq, %11, %12 : vector<6x128xi32>
    %14 = arith.extui %13 : vector<6x128xi1> to vector<6x128xi32>
    %15 = arith.sitofp %14 : vector<6x128xi32> to vector<6x128xf32>
    %cst_6 = arith.constant dense<0.000000e+00> : vector<8x128xf32>
    %16 = tpu.matmul %6, %15, %cst_6 {dimension_numbers = #tpu.dot_dimension_numbers<[1], [0], [0], [1], [0, 0, 1, 1], [], []>} : vector<8x6xf32>, vector<6x128xf32>, vector<8x128xf32> -> vector<8x128xf32>
    %17 = tpu.reciprocal %8 {approx = true} : vector<8x1xf32> -> vector<8x1xf32>
    %18 = vector.broadcast %17 : vector<8x1xf32> to vector<8x128xf32>
    %19 = arith.mulf %16, %18 : vector<8x128xf32>
    %cst_7 = arith.constant 1.000000e+00 : f32
    %20 = vector.broadcast %cst_7 : f32 to vector<8x128xf32>
    %21 = arith.subf %20, %19 : vector<8x128xf32>
    %c0_8 = arith.constant 0 : index
    %c0_9 = arith.constant 0 : index
    %c0_10 = arith.constant 0 : index
    %22 = vector.load %arg3[%c0_8, %c0_9, %c0_10] : memref<1x8x4xf32, #tpu.memory_space<vmem>>, vector<1x8x4xf32>
    %23 = vector.shape_cast %22 : vector<1x8x4xf32> to vector<8x4xf32>
    %c0_11 = arith.constant 0 : index
    %c0_12 = arith.constant 0 : index
    %c0_13 = arith.constant 0 : index
    %24 = vector.load %arg5[%c0_11, %c0_12, %c0_13] : memref<1x4x128xf32, #tpu.memory_space<vmem>>, vector<1x4x128xf32>
    %25 = vector.shape_cast %24 : vector<1x4x128xf32> to vector<4x128xf32>
    %26 = vector.extract_strided_slice %23 {offsets = [0, 0], sizes = [8, 1], strides = [1, 1]} : vector<8x4xf32> to vector<8x1xf32>
    %27 = vector.extract_strided_slice %23 {offsets = [0, 1], sizes = [8, 1], strides = [1, 1]} : vector<8x4xf32> to vector<8x1xf32>
    %28 = vector.extract_strided_slice %23 {offsets = [0, 2], sizes = [8, 1], strides = [1, 1]} : vector<8x4xf32> to vector<8x1xf32>
    %29 = vector.extract_strided_slice %23 {offsets = [0, 3], sizes = [8, 1], strides = [1, 1]} : vector<8x4xf32> to vector<8x1xf32>
    %30 = vector.extract_strided_slice %25 {offsets = [0, 0], sizes = [1, 128], strides = [1, 1]} : vector<4x128xf32> to vector<1x128xf32>
    %31 = vector.extract_strided_slice %25 {offsets = [1, 0], sizes = [1, 128], strides = [1, 1]} : vector<4x128xf32> to vector<1x128xf32>
    %32 = vector.extract_strided_slice %25 {offsets = [2, 0], sizes = [1, 128], strides = [1, 1]} : vector<4x128xf32> to vector<1x128xf32>
    %33 = vector.extract_strided_slice %25 {offsets = [3, 0], sizes = [1, 128], strides = [1, 1]} : vector<4x128xf32> to vector<1x128xf32>
    %34 = vector.broadcast %26 : vector<8x1xf32> to vector<8x128xf32>
    %35 = vector.broadcast %30 : vector<1x128xf32> to vector<8x128xf32>
    %36 = arith.subf %34, %35 : vector<8x128xf32>
    %37 = math.absf %36 : vector<8x128xf32>
    %38 = vector.broadcast %27 : vector<8x1xf32> to vector<8x128xf32>
    %39 = vector.broadcast %31 : vector<1x128xf32> to vector<8x128xf32>
    %40 = arith.subf %38, %39 : vector<8x128xf32>
    %41 = math.absf %40 : vector<8x128xf32>
    %42 = arith.addf %37, %41 : vector<8x128xf32>
    %43 = vector.broadcast %28 : vector<8x1xf32> to vector<8x128xf32>
    %44 = vector.broadcast %32 : vector<1x128xf32> to vector<8x128xf32>
    %45 = arith.subf %43, %44 : vector<8x128xf32>
    %46 = math.absf %45 : vector<8x128xf32>
    %47 = arith.addf %42, %46 : vector<8x128xf32>
    %48 = vector.broadcast %29 : vector<8x1xf32> to vector<8x128xf32>
    %49 = vector.broadcast %33 : vector<1x128xf32> to vector<8x128xf32>
    %50 = arith.subf %48, %49 : vector<8x128xf32>
    %51 = math.absf %50 : vector<8x128xf32>
    %52 = arith.addf %47, %51 : vector<8x128xf32>
    %cst_14 = arith.constant 5.000000e-01 : f32
    %53 = vector.broadcast %cst_14 : f32 to vector<8x1xf32>
    %54 = arith.mulf %53, %28 : vector<8x1xf32>
    %55 = arith.subf %26, %54 : vector<8x1xf32>
    %cst_15 = arith.constant 5.000000e-01 : f32
    %56 = vector.broadcast %cst_15 : f32 to vector<8x1xf32>
    %57 = arith.mulf %56, %29 : vector<8x1xf32>
    %58 = arith.subf %27, %57 : vector<8x1xf32>
    %cst_16 = arith.constant 5.000000e-01 : f32
    %59 = vector.broadcast %cst_16 : f32 to vector<8x1xf32>
    %60 = arith.mulf %59, %28 : vector<8x1xf32>
    %61 = arith.addf %26, %60 : vector<8x1xf32>
    %cst_17 = arith.constant 5.000000e-01 : f32
    %62 = vector.broadcast %cst_17 : f32 to vector<8x1xf32>
    %63 = arith.mulf %62, %29 : vector<8x1xf32>
    %64 = arith.addf %27, %63 : vector<8x1xf32>
    %cst_18 = arith.constant 5.000000e-01 : f32
    %65 = vector.broadcast %cst_18 : f32 to vector<1x128xf32>
    %66 = arith.mulf %65, %32 : vector<1x128xf32>
    %67 = arith.subf %30, %66 : vector<1x128xf32>
    %cst_19 = arith.constant 5.000000e-01 : f32
    %68 = vector.broadcast %cst_19 : f32 to vector<1x128xf32>
    %69 = arith.mulf %68, %33 : vector<1x128xf32>
    %70 = arith.subf %31, %69 : vector<1x128xf32>
    %cst_20 = arith.constant 5.000000e-01 : f32
    %71 = vector.broadcast %cst_20 : f32 to vector<1x128xf32>
    %72 = arith.mulf %71, %32 : vector<1x128xf32>
    %73 = arith.addf %30, %72 : vector<1x128xf32>
    %cst_21 = arith.constant 5.000000e-01 : f32
    %74 = vector.broadcast %cst_21 : f32 to vector<1x128xf32>
    %75 = arith.mulf %74, %33 : vector<1x128xf32>
    %76 = arith.addf %31, %75 : vector<1x128xf32>
    %77 = arith.subf %61, %55 : vector<8x1xf32>
    %78 = arith.subf %64, %58 : vector<8x1xf32>
    %79 = arith.mulf %77, %78 : vector<8x1xf32>
    %80 = arith.subf %73, %67 : vector<1x128xf32>
    %81 = arith.subf %76, %70 : vector<1x128xf32>
    %82 = arith.mulf %80, %81 : vector<1x128xf32>
    %83 = vector.broadcast %61 : vector<8x1xf32> to vector<8x128xf32>
    %84 = vector.broadcast %73 : vector<1x128xf32> to vector<8x128xf32>
    %85 = arith.minimumf %83, %84 : vector<8x128xf32>
    %86 = vector.broadcast %55 : vector<8x1xf32> to vector<8x128xf32>
    %87 = vector.broadcast %67 : vector<1x128xf32> to vector<8x128xf32>
    %88 = arith.maximumf %86, %87 : vector<8x128xf32>
    %89 = arith.subf %85, %88 : vector<8x128xf32>
    %cst_22 = arith.constant 0.000000e+00 : f32
    %90 = vector.broadcast %cst_22 : f32 to vector<8x128xf32>
    %91 = arith.maximumf %89, %90 : vector<8x128xf32>
    %92 = vector.broadcast %64 : vector<8x1xf32> to vector<8x128xf32>
    %93 = vector.broadcast %76 : vector<1x128xf32> to vector<8x128xf32>
    %94 = arith.minimumf %92, %93 : vector<8x128xf32>
    %95 = vector.broadcast %58 : vector<8x1xf32> to vector<8x128xf32>
    %96 = vector.broadcast %70 : vector<1x128xf32> to vector<8x128xf32>
    %97 = arith.maximumf %95, %96 : vector<8x128xf32>
    %98 = arith.subf %94, %97 : vector<8x128xf32>
    %cst_23 = arith.constant 0.000000e+00 : f32
    %99 = vector.broadcast %cst_23 : f32 to vector<8x128xf32>
    %100 = arith.maximumf %98, %99 : vector<8x128xf32>
    %101 = arith.mulf %91, %100 : vector<8x128xf32>
    %102 = vector.broadcast %79 : vector<8x1xf32> to vector<8x128xf32>
    %103 = vector.broadcast %82 : vector<1x128xf32> to vector<8x128xf32>
    %104 = arith.addf %102, %103 : vector<8x128xf32>
    %105 = arith.subf %104, %101 : vector<8x128xf32>
    %106 = tpu.reciprocal %105 {approx = true} : vector<8x128xf32> -> vector<8x128xf32>
    %107 = arith.mulf %101, %106 : vector<8x128xf32>
    %108 = vector.broadcast %61 : vector<8x1xf32> to vector<8x128xf32>
    %109 = vector.broadcast %73 : vector<1x128xf32> to vector<8x128xf32>
    %110 = arith.maximumf %108, %109 : vector<8x128xf32>
    %111 = vector.broadcast %55 : vector<8x1xf32> to vector<8x128xf32>
    %112 = vector.broadcast %67 : vector<1x128xf32> to vector<8x128xf32>
    %113 = arith.minimumf %111, %112 : vector<8x128xf32>
    %114 = arith.subf %110, %113 : vector<8x128xf32>
    %cst_24 = arith.constant 0.000000e+00 : f32
    %115 = vector.broadcast %cst_24 : f32 to vector<8x128xf32>
    %116 = arith.maximumf %114, %115 : vector<8x128xf32>
    %117 = vector.broadcast %64 : vector<8x1xf32> to vector<8x128xf32>
    %118 = vector.broadcast %76 : vector<1x128xf32> to vector<8x128xf32>
    %119 = arith.maximumf %117, %118 : vector<8x128xf32>
    %120 = vector.broadcast %58 : vector<8x1xf32> to vector<8x128xf32>
    %121 = vector.broadcast %70 : vector<1x128xf32> to vector<8x128xf32>
    %122 = arith.minimumf %120, %121 : vector<8x128xf32>
    %123 = arith.subf %119, %122 : vector<8x128xf32>
    %cst_25 = arith.constant 0.000000e+00 : f32
    %124 = vector.broadcast %cst_25 : f32 to vector<8x128xf32>
    %125 = arith.maximumf %123, %124 : vector<8x128xf32>
    %126 = arith.mulf %116, %125 : vector<8x128xf32>
    %127 = arith.subf %126, %105 : vector<8x128xf32>
    %128 = tpu.reciprocal %126 {approx = true} : vector<8x128xf32> -> vector<8x128xf32>
    %129 = arith.mulf %127, %128 : vector<8x128xf32>
    %130 = arith.subf %107, %129 : vector<8x128xf32>
    %cst_26 = arith.constant 1.000000e+00 : f32
    %131 = vector.broadcast %cst_26 : f32 to vector<8x128xf32>
    %132 = arith.mulf %131, %52 : vector<8x128xf32>
    %cst_27 = arith.constant 1.000000e+00 : f32
    %133 = vector.broadcast %cst_27 : f32 to vector<8x128xf32>
    %134 = arith.mulf %133, %21 : vector<8x128xf32>
    %135 = arith.addf %132, %134 : vector<8x128xf32>
    %cst_28 = arith.constant 1.000000e+00 : f32
    %136 = vector.broadcast %cst_28 : f32 to vector<8x128xf32>
    %137 = arith.mulf %136, %130 : vector<8x128xf32>
    %138 = arith.subf %135, %137 : vector<8x128xf32>
    %c0_29 = arith.constant 0 : index
    %c0_30 = arith.constant 0 : index
    %c0_31 = arith.constant 0 : index
    %139 = vector.load %arg6[%c0_29, %c0_30, %c0_31] : memref<1x8x128xf32, #tpu.memory_space<vmem>>, vector<1x8x128xf32>
    %140 = vector.shape_cast %139 : vector<1x8x128xf32> to vector<8x128xf32>
    %141 = vector.shape_cast %138 : vector<8x128xf32> to vector<1x8x128xf32>
    tpu.vector_store %arg6[%c0_29, %c0_30, %c0_31], %141 {strides = array<i32>} : memref<1x8x128xf32, #tpu.memory_space<vmem>>, vector<1x8x128xf32>,
    return
  }
  func.func @transform_0(%arg0: i32, %arg1: i32) -> (i32, i32, i32) {
    %c0_i32 = arith.constant 0 : i32
    %c0_i32_0 = arith.constant 0 : i32
    return %arg0, %arg1, %c0_i32 : i32, i32, i32
  }
  func.func @transform_1(%arg0: i32, %arg1: i32) -> (i32, i32, i32) {
    %c0_i32 = arith.constant 0 : i32
    %c0_i32_0 = arith.constant 0 : i32
    return %arg0, %arg1, %c0_i32 : i32, i32, i32
  }
  func.func @transform_2(%arg0: i32, %arg1: i32) -> (i32, i32, i32) {
    %c0_i32 = arith.constant 0 : i32
    %c0_i32_0 = arith.constant 0 : i32
    %c0_i32_1 = arith.constant 0 : i32
    return %arg0, %c0_i32, %c0_i32_0 : i32, i32, i32
  }
  func.func @transform_3(%arg0: i32, %arg1: i32) -> (i32, i32, i32) {
    %c0_i32 = arith.constant 0 : i32
    %c0_i32_0 = arith.constant 0 : i32
    %c0_i32_1 = arith.constant 0 : i32
    return %arg0, %c0_i32, %c0_i32_0 : i32, i32, i32
  }
  func.func @transform_4(%arg0: i32, %arg1: i32) -> (i32, i32, i32) {
    %c0_i32 = arith.constant 0 : i32
    %c0_i32_0 = arith.constant 0 : i32
    return %arg0, %arg1, %c0_i32 : i32, i32, i32
  }
}

</mosaic_0001>

<bundles_post_ra>
// kernel: tpu_custom_call.1
= control target key start
LH: loop header
LB: loop body
LE: loop exit
PB: predicated region body
PF: predicated region fallthrough
CT: control target
= control target key end

     0   :  { %9 = vsyncpa [#allocation3], 0  ;;  %s982_s0 = inlined_call_operand.vmem [shape: f32[2,8,6], index: 0, kind: input, shape index: {}]   ;;  %s983_s1 = inlined_call_operand.vmem [shape: f32[2,8,4], index: 1, kind: input, shape index: {}]   ;;  %s984_s2 = inlined_call_operand.vmem [shape: s32[2,1,128], index: 2, kind: input, shape index: {}]   ;;  %s985_s3 = inlined_call_operand.vmem [shape: f32[2,4,128], index: 3, kind: input, shape index: {}]   ;;  %s986_s4 = inlined_call_operand.hbm [shape: f32[2,8,128], index: 4, kind: output, shape index: {}]  }
   0x1   :  { %11 = vsyncpa [#allocation3 + $0x1], 0  ;;  %s856_s15 = smov 0   ;;  %s858_s16 = smov 0  }
   0x2   :  { %s860_s17 = smov 0   ;;  %s862_s18 = smov 0  }
   0x3   :  { %s864_s19 = smov 0   ;;  %s866_s20 = smov 0  }
   0x4 LB: > { %s642_s21 = sadd.s32 4294967295, %s820_s20   ;;  %s643_s22 = sadd.s32 4294967294, %s820_s20   ;;  %s820_s20 = sphi %s866_s20, %s17_s20   ;;  %s816_s19 = sphi %s864_s19, %s993_s19   ;;  %s812_s18 = sphi %s862_s18, %s992_s18   ;;  %s808_s17 = sphi %s860_s17, %s991_s17   ;;  %s804_s16 = sphi %s858_s16, %s990_s16   ;;  %s800_s15 = sphi %s856_s15, %s989_s15  }
   0x5   : > { %s29_s23 = sadd.s32 1, %s816_s19  ;;  %s146_s24 = sadd.s32 1, %s808_s17 }
   0x6   : > { %p31_p0 = scmp.ge.s32.totalorder %s29_s23, 2  ;;  %p156_p1 = scmp.ne.s32.totalorder %s808_s17, %s804_s16 }
   0x7   : > { %p157_p2 = scmp.eq.s32.totalorder %s642_s21, 1  ;;  %p162_p3 = scmp.ne.s32.totalorder %s804_s16, %s800_s15 }
   0x8   : > { %s995_s23 = smov (%p31_p0, %s29_s23), 0  ;;  %p163_p5 = scmp.eq.s32.totalorder %s643_s22, 1 }
   0x9   : > { %p896_p4 = por %p157_p2, %p156_p1  ;;  %s141_s26 = ssub.s32 %s816_s19, %s995_s23 }
   0xa   : > { %p646_p6 = scmp.ge.s32.totalorder %s820_s20, 1  ;;  %p144_p7 = scmp.eq.s32.totalorder %s141_s26, 0 }
   0xb   : > { %p903_p8 = por %p163_p5, %p162_p3  ;;  %p214_p9 = scmp.lt.s32.totalorder %s820_s20, 3 }
   0xc   : > { %s909_s28 = scalar_select %p144_p7, %s808_s17, %s146_s24  }
   0xd   : > { %p215_p10 = pnand %p646_p6, %p214_p9 }
   0xe   : > { %p256_p11 = scmp.lt.s32.totalorder (!%p215_p10), %s812_s18, 1  ;;  %s823_s11 = smov (!%p215_p10), 126  }
   0xf   : > { %218 = sbr.rel (%p215_p10) target bundleno = 450 (0x1c2), region = 36  ;;  %s827_s21 = smov (!%p215_p10), 127  }
  0x10   : > { %s656_s6 = sshll.u32 (!%p215_p10), %s812_s18, 7 }
  0x14   : > { %s913_s29 = scalar_select %p256_p11, %s812_s18, 1  ;;  %vm278_vm0 = vcmask 48128   ;;  %v822_v4 = vmov 0   ;;  %v289_v5 = vlaneseq  ;;  %v824_v6 = vmov 0.0  }
  0x15   : > { %729 = vset.pattern.permute.xlu1 %v822_v4  ;;  %661 = vmatprep.subr.mxu0 %v824_v6  ;;  %vm301_vm2 = vcmask 1045504   ;;  %vm825_vm3 = vmmov 0   ;;  %v826_v10 = vmov 1   ;;  %v828_v22 = vmov 2  }
  0x16   : > { %s648_s30 = sshll.u32 %s913_s29, 3  ;;  %s272_s14 = scalar_lea.vmem %s984_s2, %s913_s29  ;;  %v927_v7 = vshrl.u32 %v289_v5, 7  ;;  %663 = vmatprep.mubr.msk.f32.mxu0 %vm825_vm3, %v824_v6  ;;  %731 = vset.pattern.permute.xlu0 %v826_v10  ;;  %v829_v23 = vmov 3  }
  0x17   : > { %s262_s7 = scalar_lea.vmem %s982_s0, %s648_s30  ;;  %s269_s10 = scalar_lea.vmem %s983_s1, %s648_s30  ;;  %v651_v8 = vld [vmem:[%s272_s14] ss:$0 sm:$0xff] }
  0x18   : > { %v277_v0 = vld [vmem:[%s262_s7] sm:$0xff]  ;;  %vm295_vm1 = vcmp.eq.s32.totalorder %v927_v7, %v651_v8  ;;  %s650_s22 = sshll.u32 %s913_s29, 2  ;;  %v397_v33 = vsub.s32 1, %v927_v7  ;;  %v387_v35 = vsub.s32 0, %v927_v7  ;;  %s253_s29 = sand.u32 1, %s804_s16  }
  0x19   : > { %v279_v1 = vsel %vm278_vm0, %v277_v0, -inf  ;;  %v378_v2 = vld [vmem:[%s269_s10] sm:$0xff]  ;;  %v652_v9 = vsel %vm295_vm1, 1.0, %v824_v6  ;;  %s276_s30 = scalar_lea.vmem %s985_s3, %s650_s22  ;;  %s647_s5 = sshll.u32 %s253_s29, 3 }
  0x1a   : > { %280 = vmax.xlane.f32.xlu0 %v279_v1  ;;  %v424_v3 = vmul.f32 0.5, %v378_v2  ;;  %662 = vmatpush3.msk.msra.mxu0 %vm301_vm2, %v652_v9  ;;  %v379_v27 = vld [vmem:[%s276_s30] sm:$0xf]  ;;  %s255_s7 = scalar_lea.vmem [#allocation2], %s647_s5  ;;  %s521_s12 = scalar_lea.sflag [#allocation3], %s253_s29 }
  0x1b   : > { %v431_v29 = vmul.f32 0.5, %v379_v27  ;;  %s535_s8 = sshll.u32 %s255_s7, 4  ;;  %s830_s14 = smov [#allocation2]   ;;  %s536_s8 = int_to_ptr.vmem [resolvable:$true] %s535_s8 }
  0x1c   : > { %s744_s13 = scalar_lea.vmem %s536_s8, 128 }
  0x1d   : > { %v433_v30 = vrot.slane %v431_v29, 2  ;;  %p745_p12 = scmp.ne.s32.totalorder %s536_s8, %s744_s13 }
  0x1f   : > { %v435_v32 = vsub.f32 %v379_v27, %v433_v30  ;;  %v436_v34 = vadd.f32 %v433_v30, %v379_v27  ;;  %p746_p13 = pnand %p745_p12, %p896_p4 }
  0x21   : > { %v486_v36 = vrot.slane %v435_v32, %v397_v33  ;;  %v443_v38 = vsub.f32 %v436_v34, %v435_v32  ;;  %v466_v39 = vrot.slane %v435_v32, %v387_v35  ;;  %v477_v40 = vrot.slane %v436_v34, %v397_v33  ;;  %p747_p0 = pneg %p746_p13 }
  0x22   : > { %v456_v41 = vrot.slane %v436_v34, %v387_v35 }
  0x23   : > { %v445_v44 = vrot.slane %v443_v38, 1 }
  0x25   : > { %v447_v54 = vmul.f32 %v445_v44, %v443_v38 }
  0x27   : > { %v499_v61 = vrot.slane %v447_v54, %v387_v35 }
  0x30   : > { %426 = vrot.lane.b32.xlu0 %v424_v3, %s823_s11  ;;  %v398_v3 = vrot.slane %v379_v27, %v397_v33  ;;  %s533_s11 = scalar_lea.hbm %s986_s4, %s656_s6 }
  0x34   : > { %392 = vperm.xlu0 %731, %v378_v2  }
  0x38   : > { %732 = vset.pattern.permute.xlu0 %v822_v4 }
  0x39   : > { %382 = vperm.xlu0 %732, %v378_v2  }
  0xa3   : > { %v281_v11 = vpop.xlane.xlu0 %280 }
  0xa4   : > { %v282_v12 = vsub.f32 %v277_v0, %v281_v11  ;;  %v408_v0 = vsub.s32 2, %v927_v7 }
  0xa6   : > { %v283_v13 = vmul.f32 1.442695, %v282_v12  ;;  %v409_v9 = vrot.slane %v379_v27, %v408_v0 }
  0xa7   : > { %v427_v14 = vpop.permute.xlu0 %426 }
  0xa8   : > { %736 = vpow2.f32 %v283_v13  ;;  %v429_v15 = vsub.f32 %v378_v2, %v427_v14  ;;  %v430_v16 = vadd.f32 %v427_v14, %v378_v2 }
  0xaa   : > { %v437_v17 = vsub.f32 %v430_v16, %v429_v15 }
  0xac   : > { %439 = vrot.lane.b32.xlu1 %v437_v17, %s827_s21  ;;  %s748_s21 = sshll.u32 %s830_s14, 4  ;;  %s749_s21 = int_to_ptr.vmem [resolvable:$false] %s748_s21 }
  0xad   : > { %s750_s18 = scalar_lea.vmem %s749_s21, 256  ;;  %p751_p1 = scmp.lt.s32.totalorder %s536_s8, %s749_s21 }
  0xae   : > { %p752_p2 = scmp.lt.s32.totalorder %s750_s18, %s744_s13 }
  0xaf   : > { %v393_v47 = vpop.permute.xlu0 %392 }
  0xb0   : > { %450 = vperm.xlu1 %729, %v430_v16   ;;  %v399_v11 = vsub.f32 %v393_v47, %v398_v3  ;;  %p753_p3 = por %p752_p2, %p751_p1 }
  0xb2   : > { %p754_p5 = pnand %p753_p3, %p747_p0 }
  0xb4   : > { %460 = vperm.xlu1 %729, %v429_v15   ;;  %v383_v59 = vpop.permute.xlu0 %382 }
  0xb5   : > { %v737_v18 = vpop.eup %736 }
  0xb6   : > { %664 = vmatmul.mubr.msk.f32.vlgmr.msra.gmra.mxu0 %vm278_vm0, %v737_v18  ;;  %v285_v19 = vsel %vm278_vm0, %v737_v18, 0.0 }
  0xb8   : > { %730 = vset.pattern.permute.xlu1 %v826_v10  ;;  %v419_v10 = vsub.s32 3, %v927_v7 }
  0xb9   : > { %471 = vperm.xlu1 %730, %v430_v16   ;;  %v400_v16 = vand.u32 2147483647, %v399_v11 }
  0xbd   : > { %480 = vperm.xlu1 %730, %v429_v15   ;;  %v420_v15 = vrot.slane %v379_v27, %v419_v10 }
  0xe1   : > { %286 = vadd.xlane.f32.xlu1 %v285_v19 }
 0x11e   : > { %v440_v20 = vpop.permute.xlu1 %439 }
 0x11f   : > { %v442_v21 = vmul.f32 %v440_v20, %v437_v17 }
 0x121   : > { %493 = vperm.xlu0 %732, %v442_v21  }
 0x125   : > { %733 = vset.pattern.permute.xlu0 %v828_v22 }
 0x126   : > { %403 = vperm.xlu0 %733, %v378_v2  }
 0x12a   : > { %734 = vset.pattern.permute.xlu0 %v829_v23 }
 0x12b   : > { %414 = vperm.xlu0 %734, %v378_v2   ;;  %v451_v26 = vpop.permute.xlu1 %450 }
 0x12c   : > { %v504_v50 = vmax.f32 %v451_v26, %v456_v41  ;;  %v457_v52 = vmin.f32 %v451_v26, %v456_v41 }
 0x12f   : > { %735 = vset.pattern.permute.xlu0 %v822_v4  ;;  %v461_v28 = vpop.permute.xlu1 %460  ;;  %v388_v4 = vrot.slane %v379_v27, %v387_v35 }
 0x130   : > { %v505_v45 = vmin.f32 %v461_v28, %v466_v39  ;;  %v467_v48 = vmax.f32 %v461_v28, %v466_v39 }
 0x131   : > { %v389_v12 = vsub.f32 %v383_v59, %v388_v4 }
 0x132   : > { %v506_v55 = vsub.f32 %v504_v50, %v505_v45  ;;  %v468_v56 = vsub.f32 %v457_v52, %v467_v48 }
 0x133   : > { %v390_v17 = vand.u32 2147483647, %v389_v12 }
 0x134   : > { %v472_v31 = vpop.permute.xlu1 %471  ;;  %v507_v62 = vmax.f32 %v506_v55, 0.0  ;;  %v469_v63 = vmax.f32 %v468_v56, 0.0 }
 0x135   : > { %v508_v46 = vmax.f32 %v472_v31, %v477_v40  ;;  %v478_v49 = vmin.f32 %v472_v31, %v477_v40  ;;  %v401_v22 = vadd.f32 %v400_v16, %v390_v17 }
 0x138   : > { %v481_v37 = vpop.permute.xlu1 %480 }
 0x139   : > { %v509_v42 = vmin.f32 %v481_v37, %v486_v36  ;;  %v487_v43 = vmax.f32 %v481_v37, %v486_v36 }
 0x13b   : > { %v510_v51 = vsub.f32 %v508_v46, %v509_v42  ;;  %v488_v53 = vsub.f32 %v478_v49, %v487_v43 }
 0x13d   : > { %v511_v57 = vmax.f32 %v510_v51, 0.0  ;;  %v489_v60 = vmax.f32 %v488_v53, 0.0 }
 0x13f   : > { %v512_v1 = vmul.f32 %v511_v57, %v507_v62  ;;  %v490_v5 = vmul.f32 %v489_v60, %v469_v63 }
 0x16a   : > { %v287_v58 = vpop.xlane.xlu1 %286 }
 0x16b   : > { %738 = vrcp.f32 %v287_v58 }
 0x16c   : > { %740 = vrcp.f32 %v512_v1 }
 0x176   : > { %v932_v24 = vpop.f32.mrf.mxu0 }
 0x178   : > { %v665_v25 = vpop.f32.mrf.mxu0  ;;  %v739_v21 = vpop.eup %738 }
 0x179   : > { %v376_v7 = vmul.f32 %v739_v21, %v932_v24  ;;  %v741_v28 = vpop.eup %740 }
 0x17b   : > { %v377_v27 = vsub.f32 1.0, %v376_v7 }
 0x19c   : > { %v494_v2 = vpop.permute.xlu0 %493 }
 0x19d   : > { %v500_v6 = vadd.f32 %v499_v61, %v494_v2 }
 0x19f   : > { %v501_v8 = vsub.f32 %v500_v6, %v490_v5 }
 0x1a1   : > { %742 = vrcp.f32 %v501_v8  ;;  %v404_v13 = vpop.permute.xlu0 %403  ;;  %v513_v25 = vsub.f32 %v512_v1, %v501_v8 }
 0x1a2   : > { %v410_v14 = vsub.f32 %v404_v13, %v409_v9 }
 0x1a3   : > { %v515_v32 = vmul.f32 %v741_v28, %v513_v25 }
 0x1a4   : > { %v411_v19 = vand.u32 2147483647, %v410_v14 }
 0x1a6   : > { %v415_v18 = vpop.permute.xlu0 %414  ;;  %v412_v26 = vadd.f32 %v411_v19, %v401_v22 }
 0x1a7   : > { %v421_v20 = vsub.f32 %v415_v18, %v420_v15 }
 0x1a9   : > { %v422_v23 = vand.u32 2147483647, %v421_v20 }
 0x1ab   : > { %v423_v29 = vadd.f32 %v422_v23, %v412_v26 }
 0x1ad   : > { %v517_v33 = vadd.f32 %v423_v29, %v377_v27 }
 0x1ae   : > { %v743_v30 = vpop.eup %742 }
 0x1af   : > { %v503_v31 = vmul.f32 %v743_v30, %v490_v5 }
 0x1b1   : > { %v516_v34 = vsub.f32 %v503_v31, %v515_v32 }
 0x1b3   : > { %v518_v35 = vsub.f32 %v517_v33, %v516_v34 }
 0x1b5   : > { %519 = vst [vmem:[%s255_s7] sm:$0xff] %v518_v35 }
 0x1b6   : > { %757 = shalt.err (!%p754_p5)
}
 0x1b7   : > { %s758_s22 = scalar_lea.hbm %s533_s11, 128  ;;  %s762_s30 = scalar_lea.hbm %s986_s4, 256 }
 0x1b8   : > { %p759_p6 = scmp.ne.s32.totalorder %s533_s11, %s758_s22  ;;  %p763_p10 = scmp.lt.s32.totalorder %s533_s11, %s986_s4 }
 0x1b9   : > { %p764_p11 = scmp.lt.s32.totalorder %s762_s30, %s758_s22 }
 0x1ba   : > { %p760_p7 = pnand %p759_p6, %p896_p4 }
 0x1bb   : > { %p765_p12 = por %p764_p11, %p763_p10 }
 0x1bc   : > { %p761_p9 = pneg %p760_p7 }
 0x1be   : > { %p766_p13 = pnand %p765_p12, %p761_p9 }
 0x1c0   : > { %769 = shalt.err (!%p766_p13)
}
 0x1c1   : > { %666 = dma.vmem_to_hbm [thread:$0]  (%p896_p4), %s536_s8, 128, %s533_s11, %s521_s12  }
 0x1c2 PF: > { %p672_p0 = scmp.ge.s32.totalorder %s820_s20, 2  ;;  %s547_s6 = sand.u32 1, %s800_s15  }
 0x1c3   : > { %s548_s7 = scalar_lea.sflag [#allocation3], %s547_s6 }
 0x1c4   : > { %p669_p1 = pnand %p672_p0, %p903_p8 }
 0x1c6   : > { %p670_p2 = pneg %p669_p1 }
 0x1c8   : > { %795 = dma.done.wait (%p670_p2), %s548_s7, 128  }
 0x1c9   : > { %797 = vsyncadd (%p670_p2), %s548_s7, 4294967168  ;;  %s17_s20 = sadd.s32 1, %s820_s20   ;;  %s989_s15 = smov %s804_s16 }
 0x1ca   : > { %p14_p3 = scmp.ge.s32.totalorder %s17_s20, 4   ;;  %s990_s16 = smov %s808_s17 }
 0x1cb   : > { %s991_s17 = smov %s909_s28  ;;  %s992_s18 = smov %s816_s19 }
 0x1cc   : > { %s993_s19 = smov %s995_s23  ;;  %16 = sbr.rel (!%p14_p3) target bundleno = 4 (0x4), region = 80 }
 0x1d1   :  { %553 = vsyncpa [#allocation3], 1 }
 0x1d2   :  { %555 = vsyncpa [#allocation3 + $0x1], 1 }

</bundles_post_ra>
